<compile_context>
chip_gen: v5e
topology: v5e:2x2
jax: 0.10.0
libtpu: 0.0.40
codegen_flags: <defaults>
</compile_context>

<pallas_src>
import jax
import jax.numpy as jnp
from jax.experimental import pallas as pl
from jax.experimental.pallas import tpu as pltpu


def _round_up(n, m):
    return (n + m - 1) // m * m


def _cdiv(a, b):
    return (a + b - 1) // b


def _sublane_multiple(dtype):
    # 8 sublanes of 32-bit; sub-32-bit dtypes pack 32 // itemsize rows.
    return max(8, 32 // jnp.dtype(dtype).itemsize)


def _patch_embed_kernel(x_ref, w_ref, b_ref, o_ref):
    # x_ref: (TM, Kp) patch tile; w_ref: (Kp, Ep) VMEM-resident weight;
    # b_ref: (1, Ep) VMEM-resident bias; o_ref: (TM, Ep).
    acc = jnp.dot(x_ref[...], w_ref[...], preferred_element_type=jnp.float32)
    o_ref[...] = (acc + b_ref[...].astype(jnp.float32)).astype(o_ref.dtype)


def prepare_patch_embed_params(weight, bias, *, compute_dtype=None,
                               lane_multiple=128):
    """Hoistable param transform: (E,C,p,p) conv weight -> (Kp, Ep) matrix.

    Call once (or let jit constant-fold it) and reuse via
    patch_embed_prepared so the per-step path does not re-materialize a
    transposed/padded weight copy in HBM.
    """
    E, C, ph, pw = weight.shape
    K = C * ph * pw
    w2d = weight.reshape(E, K).T                    # (K, E), (c,kh,kw) order
    b2d = bias.reshape(1, E).astype(jnp.float32)    # bias added in f32 in-kernel
    if compute_dtype is not None:
        w2d = w2d.astype(compute_dtype)
    Kp = _round_up(K, lane_multiple)
    Ep = _round_up(E, lane_multiple)
    if (Kp, Ep) != (K, E):
        w2d = jnp.pad(w2d, ((0, Kp - K), (0, Ep - E)))
        b2d = jnp.pad(b2d, ((0, 0), (0, Ep - E)))
    return w2d, b2d, E


def patch_embed_prepared(x, w2d, b2d, embed_dim, patch_size, *, tm=1024,
                         compute_dtype=None, out_dtype=None):
    B, C, H, W = x.shape
    p = patch_size
    Hp, Wp = H // p, W // p
    num_patches = Hp * Wp
    K = C * p * p
    M = B * num_patches
    Kp, Ep = w2d.shape
    E = embed_dim

    # Cast BEFORE patchify so the transpose writeback (if XLA does not fuse it
    # into the kernel's input DMA) lands in the narrow dtype.
    if compute_dtype is not None:
        x = x.astype(compute_dtype)
    if out_dtype is None:
        out_dtype = x.dtype  # == compute_dtype when given, else original dtype

    # Patchify: (B,C,H,W) -> (M, K), feature order (c,kh,kw) matching the
    # Conv2d weight flattening; then lane-pad K to Kp.  allow_input_fusion
    # below lets XLA fold this producer chain into the pallas_call input DMA.
    xp = x.reshape(B, C, Hp, p, Wp, p)
    xp = jnp.transpose(xp, (0, 2, 4, 1, 3, 5)).reshape(M, K)
    if Kp != K:
        xp = jnp.pad(xp, ((0, 0), (0, Kp - K)))

    # Tile the patch dim: round to the dtype sublane multiple and rebalance so
    # the final tile is not a near-empty sliver (e.g. M=520 -> 2x264, not 512+8).
    sub = max(_sublane_multiple(xp.dtype), _sublane_multiple(out_dtype))
    n_tiles = _cdiv(M, tm)
    tm = _round_up(_cdiv(M, n_tiles), sub)
    grid_m = _cdiv(M, tm)

    x_item = jnp.dtype(xp.dtype).itemsize
    w_item = jnp.dtype(w2d.dtype).itemsize
    b_item = jnp.dtype(b2d.dtype).itemsize
    o_item = jnp.dtype(out_dtype).itemsize

    # Explicit VMEM budget: x/out double-buffered, weight/bias resident
    # (counted twice to stay safe w.r.t. the pipeliner), plus headroom.
    vmem_bytes = (2 * tm * Kp * x_item + 2 * tm * Ep * o_item
                  + 2 * Kp * Ep * w_item + 2 * Ep * b_item)
    vmem_limit = min(64 << 20, max(int(1.5 * vmem_bytes) + (4 << 20), 32 << 20))

    cost = pl.CostEstimate(
        flops=2 * M * Kp * Ep,
        transcendentals=0,
        bytes_accessed=(M * Kp * x_item + Kp * Ep * w_item + Ep * b_item
                        + M * Ep * o_item),
    )

    out = pl.pallas_call(
        _patch_embed_kernel,
        out_shape=jax.ShapeDtypeStruct((M, Ep), out_dtype),
        grid_spec=pltpu.PrefetchScalarGridSpec(
            num_scalar_prefetch=0,
            grid=(grid_m,),
            in_specs=[
                pl.BlockSpec((tm, Kp), lambda i: (i, 0)),   # patches: streamed
                pl.BlockSpec((Kp, Ep), lambda i: (0, 0)),   # weight: VMEM-resident
                pl.BlockSpec((1, Ep), lambda i: (0, 0)),    # bias: VMEM-resident
            ],
            out_specs=pl.BlockSpec((tm, Ep), lambda i: (i, 0)),
        ),
        compiler_params=pltpu.CompilerParams(
            # Independent M tiles: lets v7x shard the grid across both TCs.
            dimension_semantics=("parallel",),
            vmem_limit_bytes=vmem_limit,
            # Permit XLA to fuse the patchify transpose / pad / cast into the
            # input DMA of operand 0 instead of a standalone HBM round trip.
            allow_input_fusion=[True, False, False],
        ),
        cost_estimate=cost,
    )(xp, w2d, b2d)

    if Ep != E:
        out = out[:, :E]
    return out.reshape(B, num_patches, E)


def patch_embed(x, weight, bias, patch_size, *, tm=1024, compute_dtype=None,
                out_dtype=None):
    """x: (B,C,H,W) NCHW; weight: (E,C,p,p) Conv2d layout; bias: (E,).

    Returns (B, (H//p)*(W//p), E), matching PatchEmbeding.forward
    (norm_layer=None -> no normalization).
    """
    # TODO(synk): optional v7x-only fp8 operand path (f32 accumulation) would
    # double MXU rate again; omitted to keep the script portable to v5e/v6e.
    w2d, b2d, E = prepare_patch_embed_params(weight, bias,
                                             compute_dtype=compute_dtype)
    return patch_embed_prepared(x, w2d, b2d, E, patch_size, tm=tm,
                                compute_dtype=compute_dtype,
                                out_dtype=out_dtype)


if __name__ == "__main__":
    # Small shapes consistent with the module: img_size=16, patch_size=4,
    # in_channs=4, embed_dim=32  ->  (B, 4*4, 32) output.
    B, C, img_size, patch_size, embed_dim = 2, 4, 16, 4, 32

    key = jax.random.PRNGKey(0)
    kx, kw, kb = jax.random.split(key, 3)
    x = jax.random.normal(kx, (B, C, img_size, img_size), dtype=jnp.float32)
    fan_in = C * patch_size * patch_size
    weight = jax.random.normal(
        kw, (embed_dim, C, patch_size, patch_size), dtype=jnp.float32
    ) * (1.0 / jnp.sqrt(fan_in))
    bias = jax.random.normal(kb, (embed_dim,), dtype=jnp.float32) * 0.01

    # Jit the wrappers so the patchify / weight-prep fuse with the kernel call.
    run_f32 = jax.jit(lambda xx, ww, bb: patch_embed(xx, ww, bb, patch_size))
    run_bf16 = jax.jit(lambda xx, ww, bb: patch_embed(
        xx, ww, bb, patch_size, compute_dtype=jnp.bfloat16))

    out = jax.block_until_ready(run_f32(x, weight, bias))

    # Reference: strided conv == per-patch linear projection (pure JAX check).
    Hp = Wp = img_size // patch_size
    xr = x.reshape(B, C, Hp, patch_size, Wp, patch_size)
    xr = jnp.transpose(xr, (0, 2, 4, 1, 3, 5)).reshape(B, Hp * Wp, fan_in)
    ref = jnp.einsum("bpk,ek->bpe", xr, weight.reshape(embed_dim, fan_in)) + bias

    assert out.shape == (B, Hp * Wp, embed_dim)
    assert out.dtype == x.dtype
    assert jnp.allclose(out, ref, atol=1e-4, rtol=1e-4)

    # bf16 operand + bf16 output path (the memory-bound win on v6e/v7x).
    out_bf16 = jax.block_until_ready(run_bf16(x, weight, bias))
    assert out_bf16.shape == (B, Hp * Wp, embed_dim)
    assert out_bf16.dtype == jnp.bfloat16
    assert jnp.allclose(out_bf16.astype(jnp.float32), ref, atol=1e-1, rtol=1e-1)

    print("KERNEL_OK")
</pallas_src>

<mosaic_0001>
module attributes {stable_mosaic.version = 11 : i64} {
  func.func @_patch_embed_kernel(%arg0: i32, %arg1: memref<32x128xf32, #tpu.memory_space<vmem>>, %arg2: memref<128x128xf32, #tpu.memory_space<vmem>>, %arg3: memref<1x128xf32, #tpu.memory_space<vmem>>, %arg4: memref<32x128xf32, #tpu.memory_space<vmem>>) attributes {dimension_semantics = [#tpu.dimension_semantics<parallel>], iteration_bounds = array<i64: 1>, scalar_prefetch = 0 : i64, scratch_operands = 0 : i64, tpu.core_type = #tpu.core_type<tc>, window_params = [{transform_indices = @transform_0, window_bounds = array<i64: 32, 128>}, {pipeline_mode = #tpu.pipeline_mode<synchronous>, transform_indices = @transform_1, window_bounds = array<i64: 128, 128>}, {pipeline_mode = #tpu.pipeline_mode<synchronous>, transform_indices = @transform_2, window_bounds = array<i64: 1, 128>}, {transform_indices = @transform_3, window_bounds = array<i64: 32, 128>}]} {
    %c0 = arith.constant 0 : index
    %c0_0 = arith.constant 0 : index
    %0 = vector.load %arg1[%c0, %c0_0] : memref<32x128xf32, #tpu.memory_space<vmem>>, vector<32x128xf32>
    %c0_1 = arith.constant 0 : index
    %c0_2 = arith.constant 0 : index
    %1 = vector.load %arg2[%c0_1, %c0_2] : memref<128x128xf32, #tpu.memory_space<vmem>>, vector<128x128xf32>
    %cst = arith.constant dense<0.000000e+00> : vector<32x128xf32>
    %2 = tpu.matmul %0, %1, %cst {dimension_numbers = #tpu.dot_dimension_numbers<[1], [0], [0], [1], [0, 0, 1, 1], [], []>} : vector<32x128xf32>, vector<128x128xf32>, vector<32x128xf32> -> vector<32x128xf32>
    %c0_3 = arith.constant 0 : index
    %c0_4 = arith.constant 0 : index
    %3 = vector.load %arg3[%c0_3, %c0_4] : memref<1x128xf32, #tpu.memory_space<vmem>>, vector<1x128xf32>
    %4 = vector.broadcast %3 : vector<1x128xf32> to vector<32x128xf32>
    %5 = arith.addf %2, %4 : vector<32x128xf32>
    %c0_5 = arith.constant 0 : index
    %c0_6 = arith.constant 0 : index
    %6 = vector.load %arg4[%c0_5, %c0_6] : memref<32x128xf32, #tpu.memory_space<vmem>>, vector<32x128xf32>
    tpu.vector_store %arg4[%c0_5, %c0_6], %5 {strides = array<i32>} : memref<32x128xf32, #tpu.memory_space<vmem>>, vector<32x128xf32>,
    return
  }
  func.func @transform_0(%arg0: i32) -> (i32, i32) {
    %c0_i32 = arith.constant 0 : i32
    %c0_i32_0 = arith.constant 0 : i32
    return %arg0, %c0_i32 : i32, i32
  }
  func.func @transform_1(%arg0: i32) -> (i32, i32) {
    %c0_i32 = arith.constant 0 : i32
    %c0_i32_0 = arith.constant 0 : i32
    %c0_i32_1 = arith.constant 0 : i32
    return %c0_i32, %c0_i32_0 : i32, i32
  }
  func.func @transform_2(%arg0: i32) -> (i32, i32) {
    %c0_i32 = arith.constant 0 : i32
    %c0_i32_0 = arith.constant 0 : i32
    %c0_i32_1 = arith.constant 0 : i32
    return %c0_i32, %c0_i32_0 : i32, i32
  }
  func.func @transform_3(%arg0: i32) -> (i32, i32) {
    %c0_i32 = arith.constant 0 : i32
    %c0_i32_0 = arith.constant 0 : i32
    return %arg0, %c0_i32 : i32, i32
  }
}

</mosaic_0001>

<bundles_post_ra>
// kernel: _lambda_.2
= control target key start
LH: loop header
LB: loop body
LE: loop exit
PB: predicated region body
PF: predicated region fallthrough
CT: control target
= control target key end

     0   :  { %s322_s0 = inlined_call_operand.vmem [shape: f32[128,128], index: 0, kind: input, shape index: {}]   ;;  %s323_s1 = inlined_call_operand.vmem [shape: f32[1,128], index: 1, kind: input, shape index: {}]   ;;  %s324_s2 = inlined_call_operand.vmem [shape: f32[32,64], index: 2, kind: input, shape index: {}]   ;;  %s325_s3 = inlined_call_operand.<no memory space> [shape: f32[], index: 3, kind: input, shape index: {}]   ;;  %s326_s4 = inlined_call_operand.hbm [shape: f32[32,128], index: 4, kind: output, shape index: {}]  }
   0x1   :  { %v246_v0 = vstv %s325_s3 }
   0x2   :  { %v78_v1 = vld [vmem:[%s322_s0 + $0x78] sm:$0xff]  ;;  %v77_v2 = vld [vmem:[%s322_s0 + $0x70] sm:$0xff]  ;;  %v76_v3 = vld [vmem:[%s322_s0 + $0x68] sm:$0xff] }
   0x3   :  { %138 = vmatpush.msra.mxu2 %v78_v1  ;;  %139 = vmatpush.msra.mxu3 %v78_v1  ;;  %v75_v4 = vld [vmem:[%s322_s0 + $0x60] sm:$0xff]  ;;  %v74_v5 = vld [vmem:[%s322_s0 + $0x58] sm:$0xff] }
   0x4   :  { %83 = vmatpush.msra.mxu0 %v78_v1  ;;  %137 = vmatpush.msra.mxu1 %v78_v1 }
   0x5   :  { %141 = vmatpush.msra.mxu2 %v77_v2  ;;  %142 = vmatpush.msra.mxu3 %v77_v2 }
   0x6   :  { %84 = vmatpush.msra.mxu0 %v77_v2  ;;  %140 = vmatpush.msra.mxu1 %v77_v2 }
   0x7   :  { %144 = vmatpush.msra.mxu2 %v76_v3  ;;  %145 = vmatpush.msra.mxu3 %v76_v3 }
   0x8   :  { %85 = vmatpush.msra.mxu0 %v76_v3  ;;  %143 = vmatpush.msra.mxu1 %v76_v3 }
   0x9   :  { %147 = vmatpush.msra.mxu2 %v75_v4  ;;  %148 = vmatpush.msra.mxu3 %v75_v4 }
   0xa   :  { %10 = vsyncpa [#allocation8], 0  ;;  %v73_v6 = vld [vmem:[%s322_s0 + $0x50] sm:$0xff]  ;;  %86 = vmatpush.msra.mxu0 %v75_v4  ;;  %146 = vmatpush.msra.mxu1 %v75_v4  ;;  %v72_v7 = vld [vmem:[%s322_s0 + $0x48] sm:$0xff]  ;;  %v18_v12 = vlaneseq  ;;  %s215_s29 = smov [#allocation7]   ;;  %s122_s7 = sshll.u32 %s326_s4, 4  ;;  %s123_s7 = int_to_ptr.hbm [resolvable:$true] %s122_s7 }
   0xb   :  { %150 = vmatpush.msra.mxu2 %v74_v5  ;;  %151 = vmatpush.msra.mxu3 %v74_v5  ;;  %v71_v8 = vld [vmem:[%s322_s0 + $0x40] sm:$0xff]  ;;  %v70_v9 = vld [vmem:[%s322_s0 + $0x38] sm:$0xff]  ;;  %v69_v10 = vld [vmem:[%s322_s0 + $0x30] sm:$0xff]  ;;  %s120_s30 = sshll.u32 %s215_s29, 4  ;;  %s217_s8 = smov 8   ;;  %s121_s30 = int_to_ptr.vmem [resolvable:$true] %s120_s30 }
   0xc   :  { %87 = vmatpush.msra.mxu0 %v74_v5  ;;  %149 = vmatpush.msra.mxu1 %v74_v5  ;;  %v68_v11 = vld [vmem:[%s322_s0 + $0x28] sm:$0xff]  ;;  %v67_v13 = vld [vmem:[%s322_s0 + $0x20] sm:$0xff]  ;;  %v66_v14 = vld [vmem:[%s322_s0 + $0x18] sm:$0xff]  ;;  %v19_v15 = vand.u32 127, %v18_v12 }
   0xd   :  { %153 = vmatpush.msra.mxu2 %v73_v6  ;;  %154 = vmatpush.msra.mxu3 %v73_v6  ;;  %v65_v16 = vld [vmem:[%s322_s0 + $0x10] sm:$0xff]  ;;  %v64_v17 = vld [vmem:[%s322_s0 + $0x8] sm:$0xff]  ;;  %v136_v19 = vld [vmem:[%s324_s2 + $0x18] sm:$0xff] }
   0xe   :  { %88 = vmatpush.msra.mxu0 %v73_v6  ;;  %152 = vmatpush.msra.mxu1 %v73_v6  ;;  %vm21_vm0 = vcmp.lt.s32.totalorder %v19_v15, 64  ;;  %v135_v18 = vld [vmem:[%s324_s2 + $0x10] sm:$0xff]  ;;  %v63_v20 = vld [vmem:[%s322_s0] sm:$0xff]  ;;  %v134_v22 = vld [vmem:[%s324_s2 + $0x8] sm:$0xff] }
   0xf   :  { %156 = vmatpush.msra.mxu2 %v72_v7  ;;  %157 = vmatpush.msra.mxu3 %v72_v7  ;;  %v17_v21 = vld [vmem:[%s324_s2] sm:$0xff]  ;;  %v43_v23 = vsel %vm21_vm0, %v135_v18, %v246_v0  ;;  %v54_v24 = vsel %vm21_vm0, %v136_v19, %v246_v0  ;;  %v32_v26 = vsel %vm21_vm0, %v134_v22, %v246_v0 }
  0x10   :  { %89 = vmatpush.msra.mxu0 %v72_v7  ;;  %155 = vmatpush.msra.mxu1 %v72_v7  ;;  %v22_v25 = vsel %vm21_vm0, %v17_v21, %v246_v0  ;;  %v188_v27 = vld [vmem:[%s323_s1] ss:$0 sm:$0xff]  ;;  %s216_s1 = smov 128  }
  0x11   :  { %159 = vmatpush.msra.mxu2 %v71_v8  ;;  %160 = vmatpush.msra.mxu3 %v71_v8 }
  0x12   :  { %90 = vmatpush.msra.mxu0 %v71_v8  ;;  %158 = vmatpush.msra.mxu1 %v71_v8 }
  0x13   :  { %162 = vmatpush.msra.mxu2 %v70_v9  ;;  %163 = vmatpush.msra.mxu3 %v70_v9 }
  0x14   :  { %91 = vmatpush.msra.mxu0 %v70_v9  ;;  %161 = vmatpush.msra.mxu1 %v70_v9 }
  0x15   :  { %165 = vmatpush.msra.mxu2 %v69_v10  ;;  %166 = vmatpush.msra.mxu3 %v69_v10 }
  0x16   :  { %92 = vmatpush.msra.mxu0 %v69_v10  ;;  %164 = vmatpush.msra.mxu1 %v69_v10 }
  0x17   :  { %168 = vmatpush.msra.mxu2 %v68_v11  ;;  %169 = vmatpush.msra.mxu3 %v68_v11 }
  0x18   :  { %93 = vmatpush.msra.mxu0 %v68_v11  ;;  %167 = vmatpush.msra.mxu1 %v68_v11 }
  0x19   :  { %171 = vmatpush.msra.mxu2 %v67_v13  ;;  %172 = vmatpush.msra.mxu3 %v67_v13 }
  0x1a   :  { %94 = vmatpush.msra.mxu0 %v67_v13  ;;  %170 = vmatpush.msra.mxu1 %v67_v13 }
  0x1b   :  { %174 = vmatpush.msra.mxu2 %v66_v14  ;;  %175 = vmatpush.msra.mxu3 %v66_v14 }
  0x1c   :  { %95 = vmatpush.msra.mxu0 %v66_v14  ;;  %173 = vmatpush.msra.mxu1 %v66_v14 }
  0x1d   :  { %177 = vmatpush.msra.mxu2 %v65_v16  ;;  %178 = vmatpush.msra.mxu3 %v65_v16 }
  0x1e   :  { %96 = vmatpush.msra.mxu0 %v65_v16  ;;  %176 = vmatpush.msra.mxu1 %v65_v16 }
  0x1f   :  { %180 = vmatpush.msra.mxu2 %v64_v17  ;;  %181 = vmatpush.msra.mxu3 %v64_v17 }
  0x20   :  { %97 = vmatpush.msra.mxu0 %v64_v17  ;;  %179 = vmatpush.msra.mxu1 %v64_v17 }
  0x21   :  { %183 = vmatpush.msra.mxu2 %v63_v20  ;;  %184 = vmatpush.msra.mxu3 %v63_v20 }
  0x22   :  { %105 = vmatmul.f32.vlgmr.msra.gmra.mxu2 %v43_v23  ;;  %108 = vmatmul.f32.vlgmr.msra.gmra.mxu3 %v54_v24 }
  0x23   :  { %98 = vmatpush.msra.mxu0 %v63_v20  ;;  %182 = vmatpush.msra.mxu1 %v63_v20 }
  0x24   :  { %99 = vmatmul.f32.vlgmr.msra.gmra.mxu0 %v22_v25  ;;  %102 = vmatmul.f32.vlgmr.msra.gmra.mxu1 %v32_v26 }
  0xa1   :  { %v100_v28 = vpop.f32.mrf.mxu0  ;;  %v103_v29 = vpop.f32.mrf.mxu1 }
  0xa2   :  { %v101_v30 = vadd.f32 %v188_v27, %v100_v28  ;;  %v104_v31 = vadd.f32 %v188_v27, %v103_v29 }
  0xa4   :  { %112 = vst [vmem:[#allocation7] sm:$0xff] %v101_v30 }
  0xa5   :  { %113 = vst [vmem:[#allocation7 + $0x8] sm:$0xff] %v104_v31  ;;  %v106_v32 = vpop.f32.mrf.mxu2  ;;  %v109_v33 = vpop.f32.mrf.mxu3 }
  0xa6   :  { %v107_v34 = vadd.f32 %v188_v27, %v106_v32  ;;  %v110_v35 = vadd.f32 %v188_v27, %v109_v33 }
  0xa8   :  { %114 = vst [vmem:[#allocation7 + $0x10] sm:$0xff] %v107_v34 }
  0xa9   :  { %115 = vst [vmem:[#allocation7 + $0x18] sm:$0xff] %v110_v35 }
  0xaa   :  { %128 = dma.vmem_to_hbm [thread:$0]  %s121_s30, 512, %s123_s7, [#allocation8], %s216_s1, %s216_s1, %s217_s8  }
  0xab   :  { %213 = dma.done.wait [#allocation8], 512  }
  0xac   :  { %214 = vsyncadd [#allocation8], 4294966784 }
  0xad   :  { %133 = vsyncpa [#allocation8], 1 }

</bundles_post_ra>
